<compile_context>
chip_gen: v7x
topology: tpu7x:2x2x1
jax: 0.10.0
libtpu: 0.0.40
codegen_flags: <defaults>
</compile_context>

<pallas_src>
import jax
import jax.numpy as jnp
from jax import lax
from jax.experimental import pallas as pl
from jax.experimental.pallas import tpu as pltpu


def _make_ce_kernel(num_logits, tn, num_classes, n_valid):
    """Kernel factory: num_logits refs + labels ref + lane-dense partial output."""

    def kernel(*refs):
        logits_refs = refs[:num_logits]
        labels_ref = refs[num_logits]
        out_ref = refs[num_logits + 1]            # (1, 8, 128) f32 partial slab

        i = pl.program_id(0)
        labels = labels_ref[...]                  # (tn, 1) int32

        # ---- loop-invariant masks (hoisted out of the K unroll) ----
        row = lax.broadcasted_iota(jnp.int32, (tn, 1), 0) + i * tn
        valid = row < n_valid                     # (tn, 1) bool, masks ragged tail
        col = lax.broadcasted_iota(jnp.int32, (tn, num_classes), 1)
        onehot = col == labels                    # (tn, C) bool

        # accumulate per-row loss across the K inputs (static unroll)
        loss_vec = jnp.zeros((tn, 1), jnp.float32)
        for lref in logits_refs:
            logits = lref[...].astype(jnp.float32)                 # (tn, C)
            m = jnp.max(logits, axis=-1, keepdims=True)            # (tn, 1)
            shifted = logits - m                                   # (tn, C)
            lse = jnp.log(jnp.sum(jnp.exp(shifted), axis=-1, keepdims=True))
            picked = jnp.sum(jnp.where(onehot, shifted, 0.0),
                             axis=-1, keepdims=True)               # (tn, 1)
            loss_vec = loss_vec + (lse - picked)

        # single masked reduction; garbage in out-of-bounds rows never leaks
        total = jnp.sum(jnp.where(valid, loss_vec, 0.0))

        # lane-dense write: broadcast the scalar partial into the full slab
        out_ref[...] = jnp.broadcast_to(total, out_ref.shape).astype(jnp.float32)

    return kernel


def celoss_forward(qs, qf, label):
    """Pallas equivalent of CELoss.forward: sum_k CE(q_k, label) + CE(qf, label)."""
    logits_list = list(qs) + [qf]
    K = len(logits_list)
    N, C = logits_list[0].shape

    in_itemsize = max(int(x.dtype.itemsize) for x in logits_list)

    # --- generation-aware VMEM budget (v7x: 64 MiB, v5e/v6e: 128 MiB) ---
    try:
        vmem_cap = int(pltpu.get_tpu_info().vmem_capacity_bytes)
    except Exception:
        vmem_cap = 64 * 1024 * 1024               # conservative (v7x-sized) fallback
    vmem_limit = min(vmem_cap * 3 // 4, 96 * 1024 * 1024)
    budget_bytes = vmem_limit * 3 // 4

    # Per-row VMEM cost: K double-buffered input tiles at their native dtype,
    # plus ~4 f32-wide intermediates (f32 cast, shifted, exp(shifted), one-hot).
    bytes_per_row = K * 2 * C * in_itemsize + 4 * C * 4
    tn = budget_bytes // max(bytes_per_row, 1)
    tn = max(8, min((tn // 8) * 8, 4096))         # sublane-aligned, generous cap
    tn = min(tn, ((N + 7) // 8) * 8)              # never exceed (rounded-up) batch

    # Prefer >= ~4 grid steps (megacore sharding / pipelining) as long as each
    # step still moves >= ~2 MiB of logits, so step overhead stays amortized.
    min_rows_for_dma = (2 * 1024 * 1024) // max(K * C * in_itemsize, 1)
    min_rows_for_dma = max(8, (min_rows_for_dma // 8) * 8)
    grid_cap = max(min_rows_for_dma, ((-(-N // 4)) + 7) // 8 * 8)
    tn = min(tn, grid_cap)

    n_tiles = pl.cdiv(N, tn)

    labels2d = label.astype(jnp.int32).reshape(N, 1)    # (N, 1), unpadded

    kernel = _make_ce_kernel(K, tn, C, N)

    in_specs = [pl.BlockSpec((tn, C), lambda i: (i, 0)) for _ in range(K)]
    in_specs.append(pl.BlockSpec((tn, 1), lambda i: (i, 0)))       # labels

    out_shape = jax.ShapeDtypeStruct((n_tiles, 8, 128), jnp.float32)
    out_spec = pl.BlockSpec((1, 8, 128), lambda i: (i, 0, 0))

    logits_bytes = sum(int(x.size) * x.dtype.itemsize for x in logits_list)
    cost = pl.CostEstimate(
        flops=6 * K * N * C,
        transcendentals=K * N * C + K * N,        # exp per element + log per row
        bytes_accessed=logits_bytes + N * 4 + n_tiles * 8 * 128 * 4,
    )

    partials = pl.pallas_call(
        kernel,
        out_shape=out_shape,
        grid=(n_tiles,),
        in_specs=in_specs,
        out_specs=out_spec,
        compiler_params=pltpu.CompilerParams(
            dimension_semantics=("parallel",),    # no resident accumulator
            vmem_limit_bytes=int(vmem_limit),
        ),
        cost_estimate=cost,
    )(*logits_list, labels2d)

    # final reduction + mean over the true batch size, outside the kernel;
    # sum_k mean_n == (sum of all partials) / N stays exact.
    return jnp.sum(partials[:, 0, 0]) / jnp.float32(N)


def celoss_reference(qs, qf, label):
    """Pure-JAX reference for validation."""
    def ce(logits, lab):
        logits = logits.astype(jnp.float32)
        logp = jax.nn.log_softmax(logits, axis=-1)
        return -jnp.mean(jnp.take_along_axis(logp, lab[:, None], axis=-1))
    total = jnp.float32(0.0)
    for q in qs:
        total += ce(q, label)
    total += ce(qf, label)
    return total


if __name__ == "__main__":
    key = jax.random.PRNGKey(0)

    # --- test 1: small aligned shapes ---
    N, C, num_qs = 8, 32, 3
    keys = jax.random.split(key, num_qs + 2)
    qs = [jax.random.normal(keys[i], (N, C), dtype=jnp.float32)
          for i in range(num_qs)]
    qf = jax.random.normal(keys[num_qs], (N, C), dtype=jnp.float32)
    label = jax.random.randint(keys[num_qs + 1], (N,), 0, C, dtype=jnp.int32)

    loss = jax.block_until_ready(celoss_forward(qs, qf, label))
    ref = celoss_reference(qs, qf, label)
    assert jnp.allclose(loss, ref, rtol=1e-5, atol=1e-5), (loss, ref)

    # --- test 2: batch not a multiple of 8 (ragged tail, no wrapper pad) ---
    N2, C2, num_qs2 = 12, 160, 2
    keys2 = jax.random.split(jax.random.PRNGKey(1), num_qs2 + 2)
    qs2 = [jax.random.normal(keys2[i], (N2, C2), dtype=jnp.float32)
           for i in range(num_qs2)]
    qf2 = jax.random.normal(keys2[num_qs2], (N2, C2), dtype=jnp.float32)
    label2 = jax.random.randint(keys2[num_qs2 + 1], (N2,), 0, C2, dtype=jnp.int32)

    loss2 = jax.block_until_ready(celoss_forward(qs2, qf2, label2))
    ref2 = celoss_reference(qs2, qf2, label2)
    assert jnp.allclose(loss2, ref2, rtol=1e-5, atol=1e-5), (loss2, ref2)

    # --- test 3: bf16 inputs + larger ragged batch (dtype-aware tiling path) ---
    N3, C3, num_qs3 = 203, 128, 2
    keys3 = jax.random.split(jax.random.PRNGKey(2), num_qs3 + 2)
    qs3 = [jax.random.normal(keys3[i], (N3, C3), dtype=jnp.bfloat16)
           for i in range(num_qs3)]
    qf3 = jax.random.normal(keys3[num_qs3], (N3, C3), dtype=jnp.bfloat16)
    label3 = jax.random.randint(keys3[num_qs3 + 1], (N3,), 0, C3, dtype=jnp.int32)

    loss3 = jax.block_until_ready(celoss_forward(qs3, qf3, label3))
    ref3 = celoss_reference(qs3, qf3, label3)
    assert jnp.allclose(loss3, ref3, rtol=1e-4, atol=1e-4), (loss3, ref3)

    print("KERNEL_OK")
</pallas_src>

<mosaic_0001>
module attributes {stable_mosaic.version = 11 : i64} {
  func.func @kernel(%arg0: i32, %arg1: memref<8x32xf32, #tpu.memory_space<vmem>>, %arg2: memref<8x32xf32, #tpu.memory_space<vmem>>, %arg3: memref<8x32xf32, #tpu.memory_space<vmem>>, %arg4: memref<8x32xf32, #tpu.memory_space<vmem>>, %arg5: memref<8x1xi32, #tpu.memory_space<vmem>>, %arg6: memref<1x8x128xf32, #tpu.memory_space<vmem>>) attributes {dimension_semantics = [#tpu.dimension_semantics<parallel>], iteration_bounds = array<i64: 1>, scalar_prefetch = 0 : i64, scratch_operands = 0 : i64, tpu.core_type = #tpu.core_type<tc>, window_params = [{transform_indices = @transform_0, window_bounds = array<i64: 8, 32>}, {transform_indices = @transform_1, window_bounds = array<i64: 8, 32>}, {transform_indices = @transform_2, window_bounds = array<i64: 8, 32>}, {transform_indices = @transform_3, window_bounds = array<i64: 8, 32>}, {transform_indices = @transform_4, window_bounds = array<i64: 8, 1>}, {transform_indices = @transform_5, window_bounds = array<i64: 1, 8, 128>}]} {
    %c0 = arith.constant 0 : index
    %c0_0 = arith.constant 0 : index
    %0 = vector.load %arg5[%c0, %c0_0] : memref<8x1xi32, #tpu.memory_space<vmem>>, vector<8x1xi32>
    %1 = tpu.iota {dimensions = array<i32: 0>} : vector<8x1xi32>
    %c8_i32 = arith.constant 8 : i32
    %2 = arith.muli %arg0, %c8_i32 : i32
    %3 = vector.broadcast %2 : i32 to vector<8x1xi32>
    %4 = arith.addi %1, %3 : vector<8x1xi32>
    %c8_i32_1 = arith.constant 8 : i32
    %5 = vector.broadcast %c8_i32_1 : i32 to vector<8x1xi32>
    %6 = arith.cmpi slt, %4, %5 : vector<8x1xi32>
    %7 = tpu.iota {dimensions = array<i32: 1>} : vector<8x32xi32>
    %8 = vector.broadcast %0 : vector<8x1xi32> to vector<8x32xi32>
    %9 = arith.cmpi eq, %7, %8 : vector<8x32xi32>
    %cst = arith.constant 0.000000e+00 : f32
    %10 = vector.broadcast %cst : f32 to vector<8x1xf32>
    %c0_2 = arith.constant 0 : index
    %c0_3 = arith.constant 0 : index
    %11 = vector.load %arg1[%c0_2, %c0_3] : memref<8x32xf32, #tpu.memory_space<vmem>>, vector<8x32xf32>
    %cst_4 = arith.constant dense<0xFF800000> : vector<8xf32>
    %12 = vector.multi_reduction <maximumf>, %11, %cst_4 [1] : vector<8x32xf32> to vector<8xf32>
    %13 = vector.shape_cast %12 : vector<8xf32> to vector<8x1xf32>
    %14 = vector.broadcast %13 : vector<8x1xf32> to vector<8x32xf32>
    %15 = arith.subf %11, %14 : vector<8x32xf32>
    %16 = math.exp %15 : vector<8x32xf32>
    %cst_5 = arith.constant dense<0.000000e+00> : vector<8xf32>
    %17 = vector.multi_reduction <add>, %16, %cst_5 [1] : vector<8x32xf32> to vector<8xf32>
    %18 = vector.shape_cast %17 : vector<8xf32> to vector<8x1xf32>
    %19 = math.log %18 : vector<8x1xf32>
    %cst_6 = arith.constant 0.000000e+00 : f32
    %20 = vector.broadcast %cst_6 : f32 to vector<8x32xf32>
    %21 = arith.select %9, %15, %20 : vector<8x32xi1>, vector<8x32xf32>
    %cst_7 = arith.constant dense<0.000000e+00> : vector<8xf32>
    %22 = vector.multi_reduction <add>, %21, %cst_7 [1] : vector<8x32xf32> to vector<8xf32>
    %23 = vector.shape_cast %22 : vector<8xf32> to vector<8x1xf32>
    %24 = arith.subf %19, %23 : vector<8x1xf32>
    %25 = arith.addf %10, %24 : vector<8x1xf32>
    %c0_8 = arith.constant 0 : index
    %c0_9 = arith.constant 0 : index
    %26 = vector.load %arg2[%c0_8, %c0_9] : memref<8x32xf32, #tpu.memory_space<vmem>>, vector<8x32xf32>
    %cst_10 = arith.constant dense<0xFF800000> : vector<8xf32>
    %27 = vector.multi_reduction <maximumf>, %26, %cst_10 [1] : vector<8x32xf32> to vector<8xf32>
    %28 = vector.shape_cast %27 : vector<8xf32> to vector<8x1xf32>
    %29 = vector.broadcast %28 : vector<8x1xf32> to vector<8x32xf32>
    %30 = arith.subf %26, %29 : vector<8x32xf32>
    %31 = math.exp %30 : vector<8x32xf32>
    %cst_11 = arith.constant dense<0.000000e+00> : vector<8xf32>
    %32 = vector.multi_reduction <add>, %31, %cst_11 [1] : vector<8x32xf32> to vector<8xf32>
    %33 = vector.shape_cast %32 : vector<8xf32> to vector<8x1xf32>
    %34 = math.log %33 : vector<8x1xf32>
    %cst_12 = arith.constant 0.000000e+00 : f32
    %35 = vector.broadcast %cst_12 : f32 to vector<8x32xf32>
    %36 = arith.select %9, %30, %35 : vector<8x32xi1>, vector<8x32xf32>
    %cst_13 = arith.constant dense<0.000000e+00> : vector<8xf32>
    %37 = vector.multi_reduction <add>, %36, %cst_13 [1] : vector<8x32xf32> to vector<8xf32>
    %38 = vector.shape_cast %37 : vector<8xf32> to vector<8x1xf32>
    %39 = arith.subf %34, %38 : vector<8x1xf32>
    %40 = arith.addf %25, %39 : vector<8x1xf32>
    %c0_14 = arith.constant 0 : index
    %c0_15 = arith.constant 0 : index
    %41 = vector.load %arg3[%c0_14, %c0_15] : memref<8x32xf32, #tpu.memory_space<vmem>>, vector<8x32xf32>
    %cst_16 = arith.constant dense<0xFF800000> : vector<8xf32>
    %42 = vector.multi_reduction <maximumf>, %41, %cst_16 [1] : vector<8x32xf32> to vector<8xf32>
    %43 = vector.shape_cast %42 : vector<8xf32> to vector<8x1xf32>
    %44 = vector.broadcast %43 : vector<8x1xf32> to vector<8x32xf32>
    %45 = arith.subf %41, %44 : vector<8x32xf32>
    %46 = math.exp %45 : vector<8x32xf32>
    %cst_17 = arith.constant dense<0.000000e+00> : vector<8xf32>
    %47 = vector.multi_reduction <add>, %46, %cst_17 [1] : vector<8x32xf32> to vector<8xf32>
    %48 = vector.shape_cast %47 : vector<8xf32> to vector<8x1xf32>
    %49 = math.log %48 : vector<8x1xf32>
    %cst_18 = arith.constant 0.000000e+00 : f32
    %50 = vector.broadcast %cst_18 : f32 to vector<8x32xf32>
    %51 = arith.select %9, %45, %50 : vector<8x32xi1>, vector<8x32xf32>
    %cst_19 = arith.constant dense<0.000000e+00> : vector<8xf32>
    %52 = vector.multi_reduction <add>, %51, %cst_19 [1] : vector<8x32xf32> to vector<8xf32>
    %53 = vector.shape_cast %52 : vector<8xf32> to vector<8x1xf32>
    %54 = arith.subf %49, %53 : vector<8x1xf32>
    %55 = arith.addf %40, %54 : vector<8x1xf32>
    %c0_20 = arith.constant 0 : index
    %c0_21 = arith.constant 0 : index
    %56 = vector.load %arg4[%c0_20, %c0_21] : memref<8x32xf32, #tpu.memory_space<vmem>>, vector<8x32xf32>
    %cst_22 = arith.constant dense<0xFF800000> : vector<8xf32>
    %57 = vector.multi_reduction <maximumf>, %56, %cst_22 [1] : vector<8x32xf32> to vector<8xf32>
    %58 = vector.shape_cast %57 : vector<8xf32> to vector<8x1xf32>
    %59 = vector.broadcast %58 : vector<8x1xf32> to vector<8x32xf32>
    %60 = arith.subf %56, %59 : vector<8x32xf32>
    %61 = math.exp %60 : vector<8x32xf32>
    %cst_23 = arith.constant dense<0.000000e+00> : vector<8xf32>
    %62 = vector.multi_reduction <add>, %61, %cst_23 [1] : vector<8x32xf32> to vector<8xf32>
    %63 = vector.shape_cast %62 : vector<8xf32> to vector<8x1xf32>
    %64 = math.log %63 : vector<8x1xf32>
    %cst_24 = arith.constant 0.000000e+00 : f32
    %65 = vector.broadcast %cst_24 : f32 to vector<8x32xf32>
    %66 = arith.select %9, %60, %65 : vector<8x32xi1>, vector<8x32xf32>
    %cst_25 = arith.constant dense<0.000000e+00> : vector<8xf32>
    %67 = vector.multi_reduction <add>, %66, %cst_25 [1] : vector<8x32xf32> to vector<8xf32>
    %68 = vector.shape_cast %67 : vector<8xf32> to vector<8x1xf32>
    %69 = arith.subf %64, %68 : vector<8x1xf32>
    %70 = arith.addf %55, %69 : vector<8x1xf32>
    %cst_26 = arith.constant 0.000000e+00 : f32
    %71 = vector.broadcast %cst_26 : f32 to vector<8x1xf32>
    %72 = arith.select %6, %70, %71 : vector<8x1xi1>, vector<8x1xf32>
    %73 = vector.shape_cast %72 : vector<8x1xf32> to vector<1x8x1xf32>
    %cst_27 = arith.constant dense<0.000000e+00> : vector<1xf32>
    %74 = vector.multi_reduction <add>, %73, %cst_27 [1, 2] : vector<1x8x1xf32> to vector<1xf32>
    %75 = vector.shape_cast %74 : vector<1xf32> to vector<1x1x1xf32>
    %76 = vector.extract %75[0, 0, 0] : f32 from vector<1x1x1xf32>
    %77 = vector.broadcast %76 : f32 to vector<1x8x128xf32>
    %c0_28 = arith.constant 0 : index
    %c0_29 = arith.constant 0 : index
    %c0_30 = arith.constant 0 : index
    %78 = vector.load %arg6[%c0_28, %c0_29, %c0_30] : memref<1x8x128xf32, #tpu.memory_space<vmem>>, vector<1x8x128xf32>
    tpu.vector_store %arg6[%c0_28, %c0_29, %c0_30], %77 {strides = array<i32>} : memref<1x8x128xf32, #tpu.memory_space<vmem>>, vector<1x8x128xf32>,
    return
  }
  func.func @transform_0(%arg0: i32) -> (i32, i32) {
    %c0_i32 = arith.constant 0 : i32
    %c0_i32_0 = arith.constant 0 : i32
    return %arg0, %c0_i32 : i32, i32
  }
  func.func @transform_1(%arg0: i32) -> (i32, i32) {
    %c0_i32 = arith.constant 0 : i32
    %c0_i32_0 = arith.constant 0 : i32
    return %arg0, %c0_i32 : i32, i32
  }
  func.func @transform_2(%arg0: i32) -> (i32, i32) {
    %c0_i32 = arith.constant 0 : i32
    %c0_i32_0 = arith.constant 0 : i32
    return %arg0, %c0_i32 : i32, i32
  }
  func.func @transform_3(%arg0: i32) -> (i32, i32) {
    %c0_i32 = arith.constant 0 : i32
    %c0_i32_0 = arith.constant 0 : i32
    return %arg0, %c0_i32 : i32, i32
  }
  func.func @transform_4(%arg0: i32) -> (i32, i32) {
    %c0_i32 = arith.constant 0 : i32
    %c0_i32_0 = arith.constant 0 : i32
    return %arg0, %c0_i32 : i32, i32
  }
  func.func @transform_5(%arg0: i32) -> (i32, i32, i32) {
    %c0_i32 = arith.constant 0 : i32
    %c0_i32_0 = arith.constant 0 : i32
    %c0_i32_1 = arith.constant 0 : i32
    return %arg0, %c0_i32, %c0_i32_0 : i32, i32, i32
  }
}

</mosaic_0001>

<bundles_post_ra>
// kernel: tpu_custom_call.1
= control target key start
LH: loop header
LB: loop body
LE: loop exit
PB: predicated region body
PF: predicated region fallthrough
CT: control target
= control target key end

     0   :  { %10 = vsyncpa [#allocation3], 0  ;;  %s347_s0 = inlined_call_operand.vmem [shape: f32[8,32], index: 0, kind: input, shape index: {}]   ;;  %s348_s1 = inlined_call_operand.hbm [shape: f32[8,32], index: 1, kind: input, shape index: {}]   ;;  %s349_s2 = inlined_call_operand.vmem [shape: f32[8,32], index: 2, kind: input, shape index: {}]   ;;  %s350_s3 = inlined_call_operand.hbm [shape: f32[8,32], index: 3, kind: input, shape index: {}]   ;;  %s351_s4 = inlined_call_operand.vmem [shape: s32[8,1], index: 4, kind: input, shape index: {}]   ;;  %s352_s5 = inlined_call_operand.hbm [shape: f32[1,8,128], index: 5, kind: output, shape index: {}]  }
   0x1   :  { %11 = vsyncpa [#allocation6], 0 }
   0x2   :  { %12 = vsyncpa [#allocation4], 0  ;;  %s256_s18 = smov [#allocation2]   ;;  %s257_s20 = smov [#allocation5]  }
   0x3   :  { %s21_s19 = sshll.u32 %s256_s18, 4  ;;  %s33_s21 = sshll.u32 %s257_s20, 4  ;;  %s22_s19 = int_to_ptr.vmem [resolvable:$true] %s21_s19  ;;  %s34_s21 = int_to_ptr.vmem [resolvable:$true] %s33_s21 }
   0x4   :  { %s184_s24 = scalar_lea.hbm %s348_s1, 128 }
   0x5   :  { %p185_p0 = scmp.ne.s32.totalorder %s348_s1, %s184_s24  ;;  %p188_p1 = scmp.lt.u32.totalorder %s184_s24, %s348_s1 }
   0x7   :  { %p190_p2 = pnand %p188_p1, %p185_p0 }
   0x9   :  { %193 = shalt.err (!%p190_p2)
}
   0xa   :  { %s194_s29 = scalar_lea.vmem %s22_s19, 128  ;;  %p199_p4 = scmp.lt.s32.totalorder %s22_s19, %s22_s19 }
   0xb   :  { %p195_p3 = scmp.ne.s32.totalorder %s22_s19, %s194_s29  ;;  %p200_p5 = scmp.lt.s32.totalorder %s194_s29, %s194_s29 }
   0xd   :  { %p201_p6 = por %p200_p5, %p199_p4 }
   0xf   :  { %p202_p7 = pnand %p201_p6, %p195_p3 }
  0x11   :  { %205 = shalt.err (!%p202_p7)
}
  0x12   :  { %24 = dma.hbm_to_vmem [thread:$0]  %s348_s1, 128, %s22_s19, [#allocation3]  }
  0x13   :  { %s206_s9 = scalar_lea.hbm %s350_s3, 128 }
  0x14   :  { %p207_p8 = scmp.ne.s32.totalorder %s350_s3, %s206_s9  ;;  %p210_p9 = scmp.lt.u32.totalorder %s206_s9, %s350_s3 }
  0x16   :  { %p212_p10 = pnand %p210_p9, %p207_p8 }
  0x18   :  { %215 = shalt.err (!%p212_p10)
}
  0x19   :  { %s216_s14 = scalar_lea.vmem %s34_s21, 128  ;;  %p221_p12 = scmp.lt.s32.totalorder %s34_s21, %s34_s21 }
  0x1a   :  { %p217_p11 = scmp.ne.s32.totalorder %s34_s21, %s216_s14  ;;  %p222_p13 = scmp.lt.s32.totalorder %s216_s14, %s216_s14 }
  0x1c   :  { %p223_p0 = por %p222_p13, %p221_p12 }
  0x1e   :  { %p224_p1 = pnand %p223_p0, %p217_p11 }
  0x20   :  { %227 = shalt.err (!%p224_p1)
}
  0x21   :  { %36 = dma.hbm_to_vmem [thread:$0]  %s350_s3, 128, %s34_s21, [#allocation6]  }
  0x22   :  { %250 = dma.done.wait [#allocation3], 128  }
  0x23   :  { %251 = vsyncadd [#allocation3], 4294967168 }
  0x24   :  { %252 = dma.done.wait [#allocation6], 128  }
  0x25   :  { %253 = vsyncadd [#allocation6], 4294967168  ;;  %v258_v0 = vmov 0   ;;  %vm59_vm0 = vcmask 261120   ;;  %v58_v1 = vld [vmem:[%s347_s0] sm:$0xff]  ;;  %v113_v6 = vld [vmem:[#allocation5] sm:$0xff]  ;;  %v52_v25 = vlaneseq }
  0x26   :  { %167 = vset.pattern.permute.xlu0 %v258_v0  ;;  %v77_v2 = vld [vmem:[#allocation2] sm:$0xff]  ;;  %v60_v4 = vsel %vm59_vm0, %v58_v1, -inf  ;;  %v114_v8 = vsel %vm59_vm0, %v113_v6, -inf  ;;  %vm132_vm2 = vcmask 7168  }
  0x27   :  { %v95_v3 = vld [vmem:[%s349_s2] sm:$0xff]  ;;  %61 = vmax.xlane.f32.xlu0 %v60_v4  ;;  %v78_v7 = vsel %vm59_vm0, %v77_v2, -inf  ;;  %v53_v28 = vand.u32 127, %v52_v25  ;;  %s259_s2 = smov [#allocation7]  }
  0x28   :  { %v96_v5 = vsel %vm59_vm0, %v95_v3, -inf  ;;  %v45_v9 = vld [vmem:[%s351_s4] sm:$0xff]  ;;  %s151_s4 = sshll.u32 %s259_s2, 4  ;;  %s152_s4 = int_to_ptr.vmem [resolvable:$true] %s151_s4 }
  0x29   :  { %97 = vmax.xlane.f32.xlu1 %v96_v5  ;;  %s228_s21 = scalar_lea.vmem %s152_s4, 128  ;;  %p233_p3 = scmp.lt.s32.totalorder %s152_s4, %s152_s4 }
  0x2a   :  { %p229_p2 = scmp.ne.s32.totalorder %s152_s4, %s228_s21  ;;  %p234_p4 = scmp.lt.s32.totalorder %s228_s21, %s228_s21 }
  0x2b   :  { %79 = vmax.xlane.f32.xlu0 %v78_v7 }
  0x2c   :  { %p235_p5 = por %p234_p4, %p233_p3 }
  0x2d   :  { %115 = vmax.xlane.f32.xlu1 %v114_v8 }
  0x2e   :  { %p236_p6 = pnand %p235_p5, %p229_p2 }
  0x41   :  { %55 = vperm.xlu0 %167, %v45_v9  }
  0xb4   :  { %v62_v10 = vpop.xlane.xlu0 %61 }
  0xb5   :  { %v63_v12 = vsub.f32 %v58_v1, %v62_v10 }
  0xb6   :  { %v98_v11 = vpop.xlane.xlu1 %97 }
  0xb7   :  { %v99_v13 = vsub.f32 %v95_v3, %v98_v11  ;;  %v64_v14 = vmul.f32 1.442695, %v63_v12 }
  0xb8   :  { %v80_v15 = vpop.xlane.xlu0 %79 }
  0xb9   :  { %v100_v16 = vmul.f32 1.442695, %v99_v13  ;;  %168 = vpow2.f32 %v64_v14  ;;  %v81_v18 = vsub.f32 %v77_v2, %v80_v15 }
  0xba   :  { %v116_v17 = vpop.xlane.xlu1 %115 }
  0xbb   :  { %v117_v19 = vsub.f32 %v113_v6, %v116_v17  ;;  %v82_v20 = vmul.f32 1.442695, %v81_v18  ;;  %170 = vpow2.f32 %v100_v16 }
  0xbd   :  { %172 = vpow2.f32 %v82_v20  ;;  %v118_v21 = vmul.f32 1.442695, %v117_v19 }
  0xbf   :  { %174 = vpow2.f32 %v118_v21 }
  0xc0   :  { %v56_v31 = vpop.permute.xlu0 %55 }
  0xc1   :  { %vm57_vm1 = vcmp.eq.s32.totalorder %v53_v28, %v56_v31 }
  0xc2   :  { %v71_v33 = vsel %vm57_vm1, %v63_v12, 0.0  ;;  %v89_v35 = vsel %vm57_vm1, %v81_v18, 0.0  ;;  %v107_v37 = vsel %vm57_vm1, %v99_v13, 0.0  ;;  %v125_v39 = vsel %vm57_vm1, %v117_v19, 0.0 }
  0xc3   :  { %v169_v22 = vpop.eup %168  ;;  %v72_v34 = vsel %vm59_vm0, %v71_v33, 0.0  ;;  %v90_v36 = vsel %vm59_vm0, %v89_v35, 0.0  ;;  %v108_v38 = vsel %vm59_vm0, %v107_v37, 0.0  ;;  %v126_v40 = vsel %vm59_vm0, %v125_v39, 0.0 }
  0xc4   :  { %v66_v23 = vsel %vm59_vm0, %v169_v22, 0.0 }
  0xc5   :  { %67 = vadd.xlane.f32.xlu1 %v66_v23  ;;  %v171_v24 = vpop.eup %170 }
  0xc6   :  { %v102_v29 = vsel %vm59_vm0, %v171_v24, 0.0 }
  0xc7   :  { %v173_v26 = vpop.eup %172 }
  0xc8   :  { %v84_v27 = vsel %vm59_vm0, %v173_v26, 0.0 }
  0xc9   :  { %85 = vadd.xlane.f32.xlu1 %v84_v27  ;;  %v175_v30 = vpop.eup %174 }
  0xca   :  { %v120_v32 = vsel %vm59_vm0, %v175_v30, 0.0 }
  0xcd   :  { %103 = vadd.xlane.f32.xlu1 %v102_v29 }
  0xd1   :  { %121 = vadd.xlane.f32.xlu1 %v120_v32 }
  0xd5   :  { %73 = vadd.xlane.f32.xlu1 %v72_v34 }
  0xd9   :  { %91 = vadd.xlane.f32.xlu1 %v90_v36 }
  0xdd   :  { %109 = vadd.xlane.f32.xlu1 %v108_v38 }
  0xe1   :  { %127 = vadd.xlane.f32.xlu1 %v126_v40 }
 0x152   :  { %v68_v41 = vpop.xlane.xlu1 %67 }
 0x156   :  { %v86_v42 = vpop.xlane.xlu1 %85 }
 0x157   :  { %176 = vlog2.f32 %v86_v42 }
 0x158   :  { %178 = vlog2.f32 %v68_v41 }
 0x15a   :  { %v104_v43 = vpop.xlane.xlu1 %103 }
 0x15b   :  { %180 = vlog2.f32 %v104_v43 }
 0x15e   :  { %v122_v44 = vpop.xlane.xlu1 %121 }
 0x15f   :  { %182 = vlog2.f32 %v122_v44 }
 0x161   :  { %v177_v46 = vpop.eup %176 }
 0x162   :  { %v74_v45 = vpop.xlane.xlu1 %73  ;;  %v179_v47 = vpop.eup %178  ;;  %v88_v50 = vmul.f32 0.6931472, %v177_v46 }
 0x163   :  { %v70_v51 = vmul.f32 0.6931472, %v179_v47 }
 0x165   :  { %v181_v48 = vpop.eup %180  ;;  %v75_v56 = vsub.f32 %v70_v51, %v74_v45 }
 0x166   :  { %v92_v49 = vpop.xlane.xlu1 %91  ;;  %v106_v53 = vmul.f32 0.6931472, %v181_v48 }
 0x167   :  { %v93_v52 = vsub.f32 %v88_v50, %v92_v49 }
 0x169   :  { %v183_v54 = vpop.eup %182  ;;  %v94_v58 = vadd.f32 %v93_v52, %v75_v56 }
 0x16a   :  { %v110_v55 = vpop.xlane.xlu1 %109  ;;  %v124_v59 = vmul.f32 0.6931472, %v183_v54 }
 0x16b   :  { %v111_v57 = vsub.f32 %v106_v53, %v110_v55 }
 0x16d   :  { %v112_v61 = vadd.f32 %v111_v57, %v94_v58 }
 0x16e   :  { %v128_v60 = vpop.xlane.xlu1 %127 }
 0x16f   :  { %v129_v62 = vsub.f32 %v124_v59, %v128_v60 }
 0x171   :  { %v130_v63 = vadd.f32 %v129_v62, %v112_v61 }
 0x173   :  { %v133_v0 = vsel %vm132_vm2, %v130_v63, 0.0 }
 0x174   :  { %134 = vadd.xlane.f32.xlu1 %v133_v0 }
 0x201   :  { %v135_v1 = vpop.xlane.xlu1 %134 }
 0x202   :  { %v136_v2 = vrot.slane %v135_v1, 4 }
 0x204   :  { %v137_v3 = vadd.f32 %v136_v2, %v135_v1 }
 0x206   :  { %v138_v4 = vrot.slane %v137_v3, 2 }
 0x208   :  { %v139_v5 = vadd.f32 %v138_v4, %v137_v3 }
 0x20a   :  { %v140_v6 = vrot.slane %v139_v5, 1 }
 0x20c   :  { %v141_v7 = vadd.f32 %v140_v6, %v139_v5 }
 0x20e   :  { %161 = vpush %v141_v7 }
 0x23f   :  { %s162_s20 = spop %161 }
 0x240   :  { %v143_v8 = vstv %s162_s20 }
 0x241   :  { %144 = vst [vmem:[#allocation7] sm:$0xff] %v143_v8 }
 0x242   :  { %239 = shalt.err (!%p236_p6)
}
 0x243   :  { %s240_s24 = scalar_lea.hbm %s352_s5, 128 }
 0x244   :  { %p241_p7 = scmp.ne.s32.totalorder %s352_s5, %s240_s24  ;;  %p244_p8 = scmp.lt.u32.totalorder %s240_s24, %s352_s5 }
 0x246   :  { %p246_p9 = pnand %p244_p8, %p241_p7 }
 0x248   :  { %249 = shalt.err (!%p246_p9)
}
 0x249   :  { %154 = dma.vmem_to_hbm [thread:$0]  %s152_s4, 128, %s352_s5, [#allocation4]  }
 0x24a   :  { %254 = dma.done.wait [#allocation4], 128  }
 0x24b   :  { %255 = vsyncadd [#allocation4], 4294967168 }
 0x24c   :  { %158 = vsyncpa [#allocation3], 1 }
 0x24d   :  { %159 = vsyncpa [#allocation6], 1 }
 0x24e   :  { %160 = vsyncpa [#allocation4], 1 }

</bundles_post_ra>
